<compile_context>
chip_gen: v5e
topology: v5e:2x2
jax: 0.10.0
libtpu: 0.0.40
codegen_flags: <defaults>
</compile_context>

<pallas_src>
import functools

import jax
import jax.numpy as jnp
from jax import lax
from jax.experimental import pallas as pl
from jax.experimental.pallas import tpu as pltpu


_LANE = 128


def _round_up(v, m):
    return ((v + m - 1) // m) * m


def _conv1x1_kernel(x_ref, w_ref, b_ref, o_ref):
    # (TILE_M, Cin) @ (Cin, Cout_pad) on the MXU with f32 accumulation,
    # bias add on the VPU.  Cout_pad % 128 == 0 -> lane-dense, unmasked stores.
    acc = jnp.dot(
        x_ref[...],
        w_ref[...],
        preferred_element_type=jnp.float32,
        precision=lax.Precision.HIGHEST,
    )
    o_ref[...] = (acc + b_ref[...]).astype(o_ref.dtype)


def prepare_conv1x1_params(weight, bias):
    """One-time parameter prep (hoisted out of the per-call hot path).

    weight: (Cout, Cin, 1, 1) -> (Cin, Cout_pad), Cout_pad = round_up(Cout, 128)
    bias:   (Cout,)           -> (1,  Cout_pad)
    Padding columns are zero; they are sliced off after the kernel.
    """
    Cout, Cin = weight.shape[0], weight.shape[1]
    cout_pad = _round_up(Cout, _LANE)
    w2d = jnp.transpose(weight.reshape(Cout, Cin), (1, 0))      # (Cin, Cout)
    w2d = jnp.pad(w2d, ((0, 0), (0, cout_pad - Cout)))          # (Cin, Cout_pad)
    b2d = jnp.pad(bias.reshape(1, Cout), ((0, 0), (0, cout_pad - Cout)))
    return w2d, b2d


@functools.partial(jax.jit, static_argnames=("cout",))
def conv2d_1x1(x_nchw, w2d, b2d, *, cout):
    """1x1 stride-1 Conv2d, semantics-identical to torch.nn.Conv2d(40, 960, 1).

    x_nchw: (N, C_in, H, W)
    w2d:    (C_in, C_out_pad)  -- pre-transposed + lane-padded at prep time
    b2d:    (1,   C_out_pad)
    returns (N, cout, H, W)
    """
    N, Cin, H, W = x_nchw.shape
    cout_pad = w2d.shape[1]
    M = N * H * W

    # Adaptive M tile: whole problem in one shot when tiny (this module: M=1),
    # 512-row tiles once there is enough work to pipeline against HBM.
    if M <= 512:
        tile_m = max(8, _round_up(M, 8))
    else:
        tile_m = 512
    m_pad = _round_up(M, tile_m)
    grid_m = m_pad // tile_m

    # NCHW -> (M, Cin).  Pure metadata for H = W = 1; fuses under jit otherwise.
    x2d = jnp.transpose(x_nchw, (0, 2, 3, 1)).reshape(M, Cin)
    if m_pad != M:
        x2d = jnp.pad(x2d, ((0, m_pad - M), (0, 0)))

    itemsize = jnp.dtype(x_nchw.dtype).itemsize
    cost = pl.CostEstimate(
        flops=2 * m_pad * Cin * cout_pad,
        transcendentals=0,
        bytes_accessed=(m_pad * Cin + Cin * cout_pad + cout_pad
                        + m_pad * cout_pad) * itemsize,
    )

    out2d = pl.pallas_call(
        _conv1x1_kernel,
        out_shape=jax.ShapeDtypeStruct((m_pad, cout_pad), x_nchw.dtype),
        grid=(grid_m,),
        in_specs=[
            pl.BlockSpec((tile_m, Cin), lambda i: (i, 0)),    # x tile (pipelined)
            pl.BlockSpec((Cin, cout_pad), lambda i: (0, 0)),  # weight (VMEM-resident)
            pl.BlockSpec((1, cout_pad), lambda i: (0, 0)),    # bias   (VMEM-resident)
        ],
        out_specs=pl.BlockSpec((tile_m, cout_pad), lambda i: (i, 0)),
        compiler_params=pltpu.CompilerParams(
            dimension_semantics=("parallel",),
        ),
        cost_estimate=cost,
    )(x2d, w2d, b2d)

    # Drop M / Cout padding and restore NCHW.  These fuse under jit with the
    # reshape/transpose (metadata-only for H = W = 1).
    out2d = out2d[:M, :cout]
    return jnp.transpose(out2d.reshape(N, H, W, cout), (0, 3, 1, 2))


if __name__ == "__main__":
    key = jax.random.PRNGKey(0)
    kx, kw, kb = jax.random.split(key, 3)

    N, Cin, Cout, H, W = 1, 40, 960, 1, 1

    # Deterministic synthetic input & parameters (same shapes as the module).
    x = jax.random.normal(kx, (N, Cin, H, W), dtype=jnp.float32)
    weight = jax.random.normal(kw, (Cout, Cin, 1, 1), dtype=jnp.float32) * 0.05
    bias = jax.random.normal(kb, (Cout,), dtype=jnp.float32) * 0.05

    # One-time parameter prep (weights are constants in the module).
    w2d, b2d = prepare_conv1x1_params(weight, bias)
    w2d, b2d = jax.block_until_ready((w2d, b2d))

    out = conv2d_1x1(x, w2d, b2d, cout=Cout)
    out = jax.block_until_ready(out)

    # Reference check in plain JAX.
    ref = (
        jnp.einsum("nihw,oi->nohw", x, weight.reshape(Cout, Cin))
        + bias.reshape(1, Cout, 1, 1)
    )
    assert out.shape == (N, Cout, H, W), out.shape
    assert jnp.allclose(out, ref, atol=1e-4, rtol=1e-4)

    print("KERNEL_OK")
</pallas_src>

<mosaic_0001>
module attributes {stable_mosaic.version = 11 : i64} {
  func.func @_conv1x1_kernel(%arg0: i32, %arg1: memref<8x40xf32, #tpu.memory_space<vmem>>, %arg2: memref<40x1024xf32, #tpu.memory_space<vmem>>, %arg3: memref<1x1024xf32, #tpu.memory_space<vmem>>, %arg4: memref<8x1024xf32, #tpu.memory_space<vmem>>) attributes {dimension_semantics = [#tpu.dimension_semantics<parallel>], iteration_bounds = array<i64: 1>, scalar_prefetch = 0 : i64, scratch_operands = 0 : i64, tpu.core_type = #tpu.core_type<tc>, window_params = [{transform_indices = @transform_0, window_bounds = array<i64: 8, 40>}, {pipeline_mode = #tpu.pipeline_mode<synchronous>, transform_indices = @transform_1, window_bounds = array<i64: 40, 1024>}, {pipeline_mode = #tpu.pipeline_mode<synchronous>, transform_indices = @transform_2, window_bounds = array<i64: 1, 1024>}, {transform_indices = @transform_3, window_bounds = array<i64: 8, 1024>}]} {
    %c0 = arith.constant 0 : index
    %c0_0 = arith.constant 0 : index
    %0 = vector.load %arg1[%c0, %c0_0] : memref<8x40xf32, #tpu.memory_space<vmem>>, vector<8x40xf32>
    %c0_1 = arith.constant 0 : index
    %c0_2 = arith.constant 0 : index
    %1 = vector.load %arg2[%c0_1, %c0_2] : memref<40x1024xf32, #tpu.memory_space<vmem>>, vector<40x1024xf32>
    %cst = arith.constant dense<0.000000e+00> : vector<8x1024xf32>
    %2 = tpu.matmul %0, %1, %cst {dimension_numbers = #tpu.dot_dimension_numbers<[1], [0], [0], [1], [0, 0, 1, 1], [], []>, precision = #tpu.contract_precision<fp32>} : vector<8x40xf32>, vector<40x1024xf32>, vector<8x1024xf32> -> vector<8x1024xf32>
    %c0_3 = arith.constant 0 : index
    %c0_4 = arith.constant 0 : index
    %3 = vector.load %arg3[%c0_3, %c0_4] : memref<1x1024xf32, #tpu.memory_space<vmem>>, vector<1x1024xf32>
    %4 = vector.broadcast %3 : vector<1x1024xf32> to vector<8x1024xf32>
    %5 = arith.addf %2, %4 : vector<8x1024xf32>
    %c0_5 = arith.constant 0 : index
    %c0_6 = arith.constant 0 : index
    %6 = vector.load %arg4[%c0_5, %c0_6] : memref<8x1024xf32, #tpu.memory_space<vmem>>, vector<8x1024xf32>
    tpu.vector_store %arg4[%c0_5, %c0_6], %5 {strides = array<i32>} : memref<8x1024xf32, #tpu.memory_space<vmem>>, vector<8x1024xf32>,
    return
  }
  func.func @transform_0(%arg0: i32) -> (i32, i32) {
    %c0_i32 = arith.constant 0 : i32
    %c0_i32_0 = arith.constant 0 : i32
    return %arg0, %c0_i32 : i32, i32
  }
  func.func @transform_1(%arg0: i32) -> (i32, i32) {
    %c0_i32 = arith.constant 0 : i32
    %c0_i32_0 = arith.constant 0 : i32
    %c0_i32_1 = arith.constant 0 : i32
    return %c0_i32, %c0_i32_0 : i32, i32
  }
  func.func @transform_2(%arg0: i32) -> (i32, i32) {
    %c0_i32 = arith.constant 0 : i32
    %c0_i32_0 = arith.constant 0 : i32
    %c0_i32_1 = arith.constant 0 : i32
    return %c0_i32, %c0_i32_0 : i32, i32
  }
  func.func @transform_3(%arg0: i32) -> (i32, i32) {
    %c0_i32 = arith.constant 0 : i32
    %c0_i32_0 = arith.constant 0 : i32
    return %arg0, %c0_i32 : i32, i32
  }
}

</mosaic_0001>

<bundles_post_ra>
// kernel: conv2d_1x1.1
= control target key start
LH: loop header
LB: loop body
LE: loop exit
PB: predicated region body
PF: predicated region fallthrough
CT: control target
= control target key end

     0   :  { %8 = vsyncpa [#allocation3], 0  ;;  %s1719_s15 = smov [#allocation2]   ;;  %s1720_s17 = smov 1024   ;;  %s2409_s0 = inlined_call_operand.vmem [shape: f32[8,40], index: 0, kind: input, shape index: {}]   ;;  %s2410_s1 = inlined_call_operand.hbm [shape: f32[40,1024], index: 1, kind: input, shape index: {}]   ;;  %s2411_s2 = inlined_call_operand.vmem [shape: f32[1,1024], index: 2, kind: input, shape index: {}]   ;;  %s2412_s3 = inlined_call_operand.vmem [shape: f32[8,1024], index: 3, kind: output, shape index: {}]  }
   0x1   :  { %s15_s14 = sshll.u32 %s2410_s1, 4  ;;  %s17_s16 = sshll.u32 %s1719_s15, 4  ;;  %s16_s14 = int_to_ptr.hbm [resolvable:$true] %s15_s14  ;;  %s18_s16 = int_to_ptr.vmem [resolvable:$true] %s17_s16 }
   0x2   :  { %s1721_s18 = smov 64  }
   0x3   :  { %23 = dma.hbm_to_vmem [thread:$0]  %s16_s14, 5120, %s18_s16, [#allocation3], %s1720_s17, %s1720_s17, %s1721_s18  }
   0x4   :  { %1717 = dma.done.wait [#allocation3], 5120  }
   0x5   :  { %1718 = vsyncadd [#allocation3], 4294962176  ;;  %v63_v0 = vld [vmem:[#allocation2 + $0x100] sm:$0xff]  ;;  %v64_v8 = vld [vmem:[#allocation2 + $0x108] sm:$0xff]  ;;  %vm89_vm0 = vcmask 326656  }
   0x6   :  { %v55_v1 = vld [vmem:[#allocation2 + $0xc0] sm:$0xff]  ;;  %v1745_v3 = vand.u32 4294901760, %v63_v0  ;;  %v1755_v11 = vand.u32 4294901760, %v64_v8  ;;  %v56_v12 = vld [vmem:[#allocation2 + $0xc8] sm:$0xff] }
   0x7   :  { %v47_v2 = vld [vmem:[#allocation2 + $0x80] sm:$0xff]  ;;  %v1747_v4 = vand.u32 4294901760, %v55_v1  ;;  %v48_v13 = vld [vmem:[#allocation2 + $0x88] sm:$0xff]  ;;  %v1766_v17 = vand.u32 4294901760, %v56_v12 }
   0x8   :  { %v1749_v5 = vand.u32 4294901760, %v47_v2  ;;  %v39_v6 = vld [vmem:[#allocation2 + $0x40] sm:$0xff]  ;;  %v135_v14 = vsub.f32 %v63_v0, %v1745_v3  ;;  %105 = vmatpush.msra.mxu0 %v1745_v3  ;;  %213 = vmatpush.msra.mxu3 %v1745_v3  ;;  %v40_v18 = vld [vmem:[#allocation2 + $0x48] sm:$0xff]  ;;  %v1775_v21 = vsub.f32 %v64_v8, %v1755_v11  ;;  %v1777_v22 = vand.u32 4294901760, %v48_v13 }
   0x9   :  { %v31_v7 = vld [vmem:[#allocation2] sm:$0xff]  ;;  %v1751_v9 = vand.u32 4294901760, %v39_v6  ;;  %v1760_v15 = vsub.f32 %v55_v1, %v1747_v4  ;;  %v1783_v26 = vsub.f32 %v56_v12, %v1766_v17  ;;  %v1789_v30 = vand.u32 4294901760, %v40_v18  ;;  %v32_v37 = vld [vmem:[#allocation2 + $0x8] sm:$0xff]  ;;  %v65_v1 = vld [vmem:[#allocation2 + $0x110] sm:$0xff] }
   0xa   :  { %v1753_v10 = vand.u32 4294901760, %v31_v7  ;;  %v1764_v16 = vsub.f32 %v47_v2, %v1749_v5  ;;  %182 = vmatpush.msra.mxu2 %v135_v14  ;;  %107 = vmatpush.msra.mxu0 %v1747_v4  ;;  %v136_v23 = vand.u32 4294901760, %v135_v14  ;;  %v334_v28 = vand.u32 4294901760, %v1775_v21  ;;  %v30_v38 = vld [vmem:[%s2409_s0] sm:$0xff] }
   0xb   :  { %v1769_v19 = vsub.f32 %v39_v6, %v1751_v9  ;;  %v142_v24 = vand.u32 4294901760, %v1760_v15  ;;  %215 = vmatpush.msra.mxu3 %v1747_v4  ;;  %v340_v34 = vand.u32 4294901760, %v1783_v26  ;;  %v1801_v36 = vsub.f32 %v48_v13, %v1777_v22 }
   0xc   :  { %v1772_v20 = vsub.f32 %v31_v7, %v1753_v10  ;;  %v148_v25 = vand.u32 4294901760, %v1764_v16  ;;  %185 = vmatpush.msra.mxu2 %v1760_v15  ;;  %v137_v31 = vsub.f32 %v135_v14, %v136_v23  ;;  %109 = vmatpush.msra.mxu0 %v1749_v5  ;;  %v335_v35 = vsub.f32 %v1775_v21, %v334_v28  ;;  %v57_v7 = vld [vmem:[#allocation2 + $0xd0] sm:$0xff] }
   0xd   :  { %v154_v27 = vand.u32 4294901760, %v1769_v19  ;;  %v143_v32 = vsub.f32 %v1760_v15, %v142_v24  ;;  %217 = vmatpush.msra.mxu3 %v1749_v5  ;;  %v341_v42 = vsub.f32 %v1783_v26, %v340_v34  ;;  %v346_v45 = vand.u32 4294901760, %v1801_v36 }
   0xe   :  { %v160_v29 = vand.u32 4294901760, %v1772_v20  ;;  %v149_v33 = vsub.f32 %v1764_v16, %v148_v25  ;;  %v138_v39 = vand.u32 4294901760, %v137_v31  ;;  %188 = vmatpush.msra.mxu2 %v1764_v16  ;;  %111 = vmatpush.msra.mxu0 %v1751_v9  ;;  %v336_v46 = vand.u32 4294901760, %v335_v35 }
   0xf   :  { %v144_v40 = vand.u32 4294901760, %v143_v32  ;;  %v155_v41 = vsub.f32 %v1769_v19, %v154_v27  ;;  %219 = vmatpush.msra.mxu3 %v1751_v9  ;;  %v1820_v47 = vand.u32 4294901760, %v32_v37  ;;  %v1823_v48 = vsub.f32 %v40_v18, %v1789_v30 }
  0x10   :  { %v150_v43 = vand.u32 4294901760, %v149_v33  ;;  %v161_v44 = vsub.f32 %v1772_v20, %v160_v29  ;;  %139 = vmatpush.msra.mxu1 %v138_v39  ;;  %191 = vmatpush.msra.mxu2 %v1769_v19  ;;  %v91_v49 = vsel %vm89_vm0, %v30_v38, 0  ;;  %v347_v50 = vsub.f32 %v1801_v36, %v346_v45 }
  0x11   :  { %113 = vmatpush.msra.mxu0 %v1753_v10  ;;  %221 = vmatpush.msra.mxu3 %v1753_v10  ;;  %v1831_v51 = vand.u32 4294901760, %v91_v49  ;;  %v156_v52 = vand.u32 4294901760, %v155_v41  ;;  %v342_v53 = vand.u32 4294901760, %v341_v42  ;;  %v352_v54 = vand.u32 4294901760, %v1823_v48 }
  0x12   :  { %145 = vmatpush.msra.mxu1 %v144_v40  ;;  %194 = vmatpush.msra.mxu2 %v1772_v20  ;;  %v1836_v55 = vsub.f32 %v32_v37, %v1820_v47  ;;  %v162_v57 = vand.u32 4294901760, %v161_v44  ;;  %v348_v58 = vand.u32 4294901760, %v347_v50  ;;  %v1862_v8 = vand.u32 4294901760, %v65_v1  ;;  %v58_v20 = vld [vmem:[#allocation2 + $0xd8] sm:$0xff] }
  0x13   :  { %243 = vmatpush.msrb.mxu0 %v136_v23  ;;  %v1840_v56 = vsub.f32 %v91_v49, %v1831_v51  ;;  %337 = vmatpush.msrb.mxu3 %v336_v46  ;;  %v353_v59 = vsub.f32 %v1823_v48, %v352_v54  ;;  %v1870_v12 = vand.u32 4294901760, %v57_v7 }
  0x14   :  { %303 = vmatpush.msrb.mxu2 %v1755_v11  ;;  %151 = vmatpush.msra.mxu1 %v150_v43  ;;  %v358_v60 = vand.u32 4294901760, %v1836_v55 }
  0x15   :  { %247 = vmatpush.msrb.mxu0 %v142_v24  ;;  %v1848_v61 = vand.u32 4294901760, %v1840_v56  ;;  %343 = vmatpush.msrb.mxu3 %v342_v53  ;;  %v354_v62 = vand.u32 4294901760, %v353_v59  ;;  %v1886_v14 = vsub.f32 %v57_v7, %v1870_v12 }
  0x16   :  { %305 = vmatpush.msrb.mxu2 %v1766_v17  ;;  %157 = vmatpush.msra.mxu1 %v156_v52  ;;  %v359_v63 = vsub.f32 %v1836_v55, %v358_v60 }
  0x17   :  { %251 = vmatpush.msrb.mxu0 %v148_v25  ;;  %v117_v0 = vsub.f32 %v1840_v56, %v1848_v61  ;;  %349 = vmatpush.msrb.mxu3 %v348_v58  ;;  %v50_v25 = vld [vmem:[#allocation2 + $0x98] sm:$0xff] }
  0x18   :  { %307 = vmatpush.msrb.mxu2 %v1777_v22  ;;  %163 = vmatpush.msra.mxu1 %v162_v57  ;;  %v360_v2 = vand.u32 4294901760, %v359_v63  ;;  %v1936_v31 = vand.u32 4294901760, %v50_v25 }
  0x19   :  { %255 = vmatpush.msrb.mxu0 %v154_v27  ;;  %355 = vmatpush.msrb.mxu3 %v354_v62  ;;  %v1858_v6 = vand.u32 4294901760, %v117_v0 }
  0x1a   :  { %277 = vmatpush.msrb.mxu1 %v1745_v3  ;;  %309 = vmatpush.msrb.mxu2 %v1789_v30  ;;  %v49_v3 = vld [vmem:[#allocation2 + $0x90] sm:$0xff]  ;;  %v1958_v40 = vsub.f32 %v50_v25, %v1936_v31 }
  0x1b   :  { %197 = vmatmul.f32.vlgmr.msra.gmra.mxu2 %v1840_v56  ;;  %259 = vmatpush.msrb.mxu0 %v160_v29  ;;  %v1878_v13 = vand.u32 4294901760, %v49_v3 }
  0x1c   :  { %279 = vmatpush.msrb.mxu1 %v1747_v4  ;;  %311 = vmatpush.msrb.mxu2 %v1820_v47  ;;  %v1876_v4 = vsub.f32 %v65_v1, %v1862_v8  ;;  %v67_v1 = vld [vmem:[#allocation2 + $0x120] sm:$0xff] }
  0x1d   :  { %361 = vmatpush.msrb.mxu3 %v360_v2  ;;  %119 = vmatmul.f32.vlgmr.msra.gmra.mxu0 %v1858_v6  ;;  %v1895_v16 = vsub.f32 %v49_v3, %v1878_v13  ;;  %v59_v2 = vld [vmem:[#allocation2 + $0xe0] sm:$0xff] }
  0x1e   :  { %281 = vmatpush.msrb.mxu1 %v1749_v5  ;;  %441 = vmatpush.msra.mxu2 %v334_v28  ;;  %v41_v5 = vld [vmem:[#allocation2 + $0x50] sm:$0xff]  ;;  %v532_v15 = vand.u32 4294901760, %v1876_v4  ;;  %v42_v28 = vld [vmem:[#allocation2 + $0x58] sm:$0xff]  ;;  %v2029_v3 = vand.u32 4294901760, %v59_v2 }
  0x1f   :  { %225 = vmatmul.f32.vlgmr.msra.gmra.mxu3 %v1848_v61  ;;  %380 = vmatpush.msra.mxu0 %v1775_v21  ;;  %v1897_v18 = vand.u32 4294901760, %v41_v5  ;;  %v544_v24 = vand.u32 4294901760, %v1895_v16  ;;  %v1949_v35 = vand.u32 4294901760, %v42_v28 }
  0x20   :  { %283 = vmatpush.msrb.mxu1 %v1751_v9  ;;  %445 = vmatpush.msra.mxu2 %v340_v34  ;;  %v66_v9 = vld [vmem:[#allocation2 + $0x118] sm:$0xff] }
  0x21   :  { %475 = vmatpush.msra.mxu3 %v1755_v11  ;;  %165 = vmatmul.f32.vlgmr.msra.gmra.mxu1 %v1831_v51  ;;  %v1905_v19 = vand.u32 4294901760, %v66_v9  ;;  %v1916_v23 = vsub.f32 %v41_v5, %v1897_v18  ;;  %v545_v33 = vsub.f32 %v1895_v16, %v544_v24  ;;  %v43_v5 = vld [vmem:[#allocation2 + $0x60] sm:$0xff] }
  0x22   :  { %285 = vmatpush.msrb.mxu1 %v1753_v10  ;;  %383 = vmatpush.msra.mxu0 %v1783_v26  ;;  %v33_v10 = vld [vmem:[#allocation2 + $0x10] sm:$0xff]  ;;  %v1921_v26 = vand.u32 4294901760, %v58_v20 }
  0x23   :  { %449 = vmatpush.msra.mxu2 %v346_v45  ;;  %477 = vmatpush.msra.mxu3 %v1766_v17  ;;  %v1909_v21 = vand.u32 4294901760, %v33_v10  ;;  %v1929_v27 = vsub.f32 %v66_v9, %v1905_v19  ;;  %v550_v34 = vand.u32 4294901760, %v1916_v23  ;;  %v546_v41 = vand.u32 4294901760, %v545_v33  ;;  %v68_v9 = vld [vmem:[#allocation2 + $0x128] sm:$0xff] }
  0x24   :  { %411 = vmatpush.msra.mxu1 %v1755_v11  ;;  %386 = vmatpush.msra.mxu0 %v1801_v36  ;;  %v538_v11 = vand.u32 4294901760, %v1886_v14  ;;  %v34_v36 = vld [vmem:[#allocation2 + $0x18] sm:$0xff]  ;;  %v1970_v45 = vsub.f32 %v42_v28, %v1949_v35 }
  0x25   :  { %453 = vmatpush.msra.mxu2 %v352_v54  ;;  %479 = vmatpush.msra.mxu3 %v1777_v22  ;;  %v1934_v29 = vsub.f32 %v33_v10, %v1909_v21  ;;  %v730_v38 = vand.u32 4294901760, %v1929_v27  ;;  %v551_v42 = vsub.f32 %v1916_v23, %v550_v34  ;;  %v1964_v43 = vand.u32 4294901760, %v34_v36 }
  0x26   :  { %413 = vmatpush.msra.mxu1 %v1766_v17  ;;  %389 = vmatpush.msra.mxu0 %v1823_v48  ;;  %v533_v17 = vsub.f32 %v1876_v4, %v532_v15  ;;  %v742_v48 = vand.u32 4294901760, %v1958_v40  ;;  %v748_v53 = vand.u32 4294901760, %v1970_v45 }
  0x27   :  { %457 = vmatpush.msra.mxu2 %v358_v60  ;;  %481 = vmatpush.msra.mxu3 %v1789_v30  ;;  %v556_v39 = vand.u32 4294901760, %v1934_v29  ;;  %v731_v46 = vsub.f32 %v1929_v27, %v730_v38  ;;  %v552_v49 = vand.u32 4294901760, %v551_v42  ;;  %v1984_v50 = vsub.f32 %v34_v36, %v1964_v43 }
  0x28   :  { %415 = vmatpush.msra.mxu1 %v1777_v22  ;;  %317 = vmatmul.f32.vlgmr.msrb.gmra.mxu2 %v1858_v6  ;;  %v539_v22 = vsub.f32 %v1886_v14, %v538_v11  ;;  %v534_v32 = vand.u32 4294901760, %v533_v17  ;;  %v743_v57 = vsub.f32 %v1958_v40, %v742_v48  ;;  %v749_v60 = vsub.f32 %v1970_v45, %v748_v53 }
  0x29   :  { %578 = vmatpush.msrb.mxu2 %v1876_v4  ;;  %261 = vmatmul.f32.vlgmr.msrb.gmra.mxu0 %v1831_v51  ;;  %v732_v54 = vand.u32 4294901760, %v731_v46  ;;  %v754_v58 = vand.u32 4294901760, %v1984_v50 }
  0x2a   :  { %392 = vmatpush.msra.mxu0 %v1836_v55  ;;  %417 = vmatpush.msra.mxu1 %v1789_v30  ;;  %v1947_v30 = vsub.f32 %v58_v20, %v1921_v26  ;;  %v540_v37 = vand.u32 4294901760, %v539_v22  ;;  %v744_v62 = vand.u32 4294901760, %v743_v57  ;;  %v750_v0 = vand.u32 4294901760, %v749_v60  ;;  %v60_v20 = vld [vmem:[#allocation2 + $0xe8] sm:$0xff] }
  0x2b   :  { %483 = vmatpush.msra.mxu3 %v1820_v47  ;;  %581 = vmatpush.msrb.mxu2 %v1886_v14  ;;  %v755_v63 = vsub.f32 %v1984_v50, %v754_v58  ;;  %v2046_v14 = vsub.f32 %v59_v2, %v2029_v3 }
  0x2c   :  { %501 = vmatpush.msrb.mxu0 %v1862_v8  ;;  %363 = vmatmul.f32.vlgmr.msrb.gmra.mxu3 %v1831_v51  ;;  %v736_v44 = vand.u32 4294901760, %v1947_v30 }
  0x2d   :  { %609 = vmatpush.msrb.mxu3 %v1862_v8  ;;  %287 = vmatmul.f32.vlgmr.msrb.gmra.mxu1 %v1831_v51  ;;  %v756_v7 = vand.u32 4294901760, %v755_v63 }
  0x2e   :  { %419 = vmatpush.msra.mxu1 %v1820_v47  ;;  %503 = vmatpush.msrb.mxu0 %v1870_v12  ;;  %v557_v47 = vsub.f32 %v1934_v29, %v556_v39  ;;  %v737_v52 = vsub.f32 %v1947_v30, %v736_v44 }
  0x2f   :  { %584 = vmatpush.msrb.mxu2 %v1895_v16  ;;  %611 = vmatpush.msrb.mxu3 %v1870_v12  ;;  %v2054_v16 = vand.u32 4294901760, %v43_v5 }
  0x30   :  { %535 = vmatpush.msrb.mxu1 %v534_v32  ;;  %505 = vmatpush.msrb.mxu0 %v1878_v13  ;;  %v558_v55 = vand.u32 4294901760, %v557_v47  ;;  %v738_v59 = vand.u32 4294901760, %v737_v52 }
  0x31   :  { %587 = vmatpush.msrb.mxu2 %v1916_v23  ;;  %613 = vmatpush.msrb.mxu3 %v1878_v13  ;;  %v2077_v23 = vsub.f32 %v43_v5, %v2054_v16 }
  0x32   :  { %541 = vmatpush.msrb.mxu1 %v540_v37  ;;  %459 = vmatmul.f32.vlgmr.msra.gmra.mxu2 %v1831_v51 }
  0x33   :  { %507 = vmatpush.msrb.mxu0 %v1897_v18  ;;  %590 = vmatpush.msrb.mxu2 %v1934_v29  ;;  %v946_v33 = vand.u32 4294901760, %v2077_v23 }
  0x34   :  { %547 = vmatpush.msrb.mxu1 %v546_v41  ;;  %615 = vmatpush.msrb.mxu3 %v1897_v18 }
  0x35   :  { %699 = vmatpush.msra.mxu2 %v1905_v19  ;;  %395 = vmatmul.f32.vlgmr.msra.gmra.mxu0 %v1840_v56  ;;  %v947_v41 = vsub.f32 %v2077_v23, %v946_v33 }
  0x36   :  { %485 = vmatmul.f32.vlgmr.msra.gmra.mxu3 %v1831_v51  ;;  %509 = vmatpush.msrb.mxu0 %v1909_v21 }
  0x37   :  { %553 = vmatpush.msrb.mxu1 %v552_v49  ;;  %617 = vmatpush.msrb.mxu3 %v1909_v21  ;;  %v948_v49 = vand.u32 4294901760, %v947_v41 }
  0x38   :  { %639 = vmatpush.msra.mxu0 %v532_v15  ;;  %701 = vmatpush.msra.mxu2 %v1921_v26 }
  0x39   :  { %733 = vmatpush.msra.mxu3 %v732_v54  ;;  %423 = vmatmul.f32.vlgmr.msra.gmra.mxu1 %v1848_v61 }
  0x3a   :  { %559 = vmatpush.msrb.mxu1 %v558_v55  ;;  %643 = vmatpush.msra.mxu0 %v538_v11  ;;  %v934_v11 = vand.u32 4294901760, %v2046_v14 }
  0x3b   :  { %703 = vmatpush.msra.mxu2 %v1936_v31  ;;  %739 = vmatpush.msra.mxu3 %v738_v59 }
  0x3c   :  { %673 = vmatpush.msra.mxu1 %v1862_v8  ;;  %647 = vmatpush.msra.mxu0 %v544_v24  ;;  %v2023_v8 = vand.u32 4294901760, %v67_v1  ;;  %v52_v24 = vld [vmem:[#allocation2 + $0xa8] sm:$0xff]  ;;  %v935_v22 = vsub.f32 %v2046_v14, %v934_v11 }
  0x3d   :  { %705 = vmatpush.msra.mxu2 %v1949_v35  ;;  %745 = vmatpush.msra.mxu3 %v744_v62  ;;  %v2098_v29 = vand.u32 4294901760, %v52_v24 }
  0x3e   :  { %675 = vmatpush.msra.mxu1 %v1870_v12  ;;  %593 = vmatmul.f32.vlgmr.msrb.gmra.mxu2 %v1840_v56  ;;  %v51_v12 = vld [vmem:[#allocation2 + $0xa0] sm:$0xff]  ;;  %v2036_v4 = vsub.f32 %v67_v1, %v2023_v8 }
  0x3f   :  { %651 = vmatpush.msra.mxu0 %v550_v34  ;;  %707 = vmatpush.msra.mxu2 %v1964_v43 }
  0x40   :  { %677 = vmatpush.msra.mxu1 %v1878_v13  ;;  %751 = vmatpush.msra.mxu3 %v750_v0  ;;  %v2041_v13 = vand.u32 4294901760, %v51_v12  ;;  %v928_v15 = vand.u32 4294901760, %v2036_v4  ;;  %v69_v0 = vld [vmem:[#allocation2 + $0x130] sm:$0xff] }
  0x41   :  { %837 = vmatpush.msrb.mxu2 %v730_v38  ;;  %515 = vmatmul.f32.vlgmr.msrb.gmra.mxu0 %v1858_v6  ;;  %v36_v38 = vld [vmem:[#allocation2 + $0x28] sm:$0xff]  ;;  %v2184_v2 = vand.u32 4294901760, %v69_v0 }
  0x42   :  { %621 = vmatmul.f32.vlgmr.msrb.gmra.mxu3 %v1848_v61  ;;  %655 = vmatpush.msra.mxu0 %v556_v39  ;;  %v2059_v10 = vsub.f32 %v51_v12, %v2041_v13  ;;  %v929_v17 = vsub.f32 %v2036_v4, %v928_v15  ;;  %v53_v12 = vld [vmem:[#allocation2 + $0xb0] sm:$0xff] }
  0x43   :  { %679 = vmatpush.msra.mxu1 %v1897_v18  ;;  %757 = vmatpush.msra.mxu3 %v756_v7  ;;  %v35_v18 = vld [vmem:[#allocation2 + $0x20] sm:$0xff]  ;;  %v61_v7 = vld [vmem:[#allocation2 + $0xf0] sm:$0xff]  ;;  %v2205_v5 = vand.u32 4294901760, %v53_v12 }
  0x44   :  { %776 = vmatpush.msrb.mxu0 %v1929_v27  ;;  %841 = vmatpush.msrb.mxu2 %v736_v44  ;;  %v940_v25 = vand.u32 4294901760, %v2059_v10  ;;  %v930_v32 = vand.u32 4294901760, %v929_v17  ;;  %v2129_v44 = vand.u32 4294901760, %v36_v38 }
  0x45   :  { %871 = vmatpush.msrb.mxu3 %v1905_v19  ;;  %561 = vmatmul.f32.vlgmr.msrb.gmra.mxu1 %v1831_v51 }
  0x46   :  { %681 = vmatpush.msra.mxu1 %v1909_v21  ;;  %779 = vmatpush.msrb.mxu0 %v1947_v30  ;;  %v2069_v21 = vand.u32 4294901760, %v35_v18  ;;  %v941_v34 = vsub.f32 %v2059_v10, %v940_v25  ;;  %v2151_v52 = vsub.f32 %v36_v38, %v2129_v44 }
  0x47   :  { %845 = vmatpush.msrb.mxu2 %v742_v48  ;;  %873 = vmatpush.msrb.mxu3 %v1921_v26 }
  0x48   :  { %807 = vmatpush.msrb.mxu1 %v1905_v19  ;;  %782 = vmatpush.msrb.mxu0 %v1958_v40  ;;  %v2065_v19 = vand.u32 4294901760, %v68_v9  ;;  %v2096_v28 = vsub.f32 %v35_v18, %v2069_v21  ;;  %v2120_v40 = vsub.f32 %v52_v24, %v2098_v29  ;;  %v942_v42 = vand.u32 4294901760, %v941_v34  ;;  %v70_v18 = vld [vmem:[#allocation2 + $0x138] sm:$0xff] }
  0x49   :  { %849 = vmatpush.msrb.mxu2 %v748_v53  ;;  %875 = vmatpush.msrb.mxu3 %v1936_v31  ;;  %v1150_v59 = vand.u32 4294901760, %v2151_v52 }
  0x4a   :  { %809 = vmatpush.msrb.mxu1 %v1921_v26  ;;  %713 = vmatmul.f32.vlgmr.msra.gmra.mxu2 %v1858_v6  ;;  %v2083_v26 = vand.u32 4294901760, %v60_v20  ;;  %v2091_v27 = vsub.f32 %v68_v9, %v2065_v19  ;;  %v952_v39 = vand.u32 4294901760, %v2096_v28  ;;  %v1138_v48 = vand.u32 4294901760, %v2120_v40 }
  0x4b   :  { %785 = vmatpush.msrb.mxu0 %v1970_v45  ;;  %853 = vmatpush.msrb.mxu2 %v754_v58  ;;  %v1151_v63 = vsub.f32 %v2151_v52, %v1150_v59 }
  0x4c   :  { %811 = vmatpush.msrb.mxu1 %v1936_v31  ;;  %877 = vmatpush.msrb.mxu3 %v1949_v35  ;;  %v44_v31 = vld [vmem:[#allocation2 + $0x68] sm:$0xff]  ;;  %v2109_v30 = vsub.f32 %v60_v20, %v2083_v26  ;;  %v1126_v36 = vand.u32 4294901760, %v2091_v27  ;;  %v953_v47 = vsub.f32 %v2096_v28, %v952_v39  ;;  %v1139_v57 = vsub.f32 %v2120_v40, %v1138_v48 }
  0x4d   :  { %657 = vmatmul.f32.vlgmr.msra.gmra.mxu0 %v1831_v51  ;;  %759 = vmatmul.f32.vlgmr.msra.gmra.mxu3 %v1831_v51  ;;  %v2114_v37 = vand.u32 4294901760, %v44_v31  ;;  %v2230_v20 = vand.u32 4294901760, %v70_v18 }
  0x4e   :  { %974 = vmatpush.msra.mxu2 %v2036_v4  ;;  %788 = vmatpush.msrb.mxu0 %v1984_v50  ;;  %v1127_v45 = vsub.f32 %v2091_v27, %v1126_v36  ;;  %v954_v55 = vand.u32 4294901760, %v953_v47  ;;  %v1140_v62 = vand.u32 4294901760, %v1139_v57  ;;  %v2199_v4 = vsub.f32 %v69_v0, %v2184_v2 }
  0x4f   :  { %813 = vmatpush.msrb.mxu1 %v1949_v35  ;;  %879 = vmatpush.msrb.mxu3 %v1964_v43  ;;  %v936_v35 = vand.u32 4294901760, %v935_v22  ;;  %v2136_v46 = vsub.f32 %v44_v31, %v2114_v37 }
  0x50   :  { %683 = vmatmul.f32.vlgmr.msra.gmra.mxu1 %v1831_v51  ;;  %897 = vmatpush.msra.mxu0 %v2023_v8  ;;  %v1128_v53 = vand.u32 4294901760, %v1127_v45  ;;  %v1324_v9 = vand.u32 4294901760, %v2199_v4 }
  0x51   :  { %977 = vmatpush.msra.mxu2 %v2046_v14  ;;  %1005 = vmatpush.msra.mxu3 %v2023_v8  ;;  %v1144_v54 = vand.u32 4294901760, %v2136_v46 }
  0x52   :  { %815 = vmatpush.msrb.mxu1 %v1964_v43  ;;  %899 = vmatpush.msra.mxu0 %v2029_v3  ;;  %v1132_v43 = vand.u32 4294901760, %v2109_v30  ;;  %v1325_v17 = vsub.f32 %v2199_v4, %v1324_v9 }
  0x53   :  { %980 = vmatpush.msra.mxu2 %v2059_v10  ;;  %1007 = vmatpush.msra.mxu3 %v2029_v3  ;;  %v1145_v60 = vsub.f32 %v2136_v46, %v1144_v54  ;;  %v2223_v10 = vsub.f32 %v53_v12, %v2205_v5 }
  0x54   :  { %931 = vmatpush.msra.mxu1 %v930_v32  ;;  %855 = vmatmul.f32.vlgmr.msrb.gmra.mxu2 %v1831_v51  ;;  %v1133_v50 = vsub.f32 %v2109_v30, %v1132_v43  ;;  %v46_v32 = vld [vmem:[#allocation2 + $0x78] sm:$0xff] }
  0x55   :  { %901 = vmatpush.msra.mxu0 %v2041_v13  ;;  %983 = vmatpush.msra.mxu2 %v2077_v23  ;;  %v1146_v1 = vand.u32 4294901760, %v1145_v60  ;;  %v1336_v24 = vand.u32 4294901760, %v2223_v10 }
  0x56   :  { %937 = vmatpush.msra.mxu1 %v936_v35  ;;  %1009 = vmatpush.msra.mxu3 %v2041_v13  ;;  %v1134_v58 = vand.u32 4294901760, %v1133_v50  ;;  %v38_v35 = vld [vmem:[#allocation2 + $0x38] sm:$0xff] }
  0x57   :  { %791 = vmatmul.f32.vlgmr.msrb.gmra.mxu0 %v1840_v56  ;;  %881 = vmatmul.f32.vlgmr.msrb.gmra.mxu3 %v1831_v51  ;;  %v1337_v34 = vsub.f32 %v2223_v10, %v1336_v24 }
  0x58   :  { %903 = vmatpush.msra.mxu0 %v2054_v16  ;;  %943 = vmatpush.msra.mxu1 %v942_v42  ;;  %v2290_v42 = vand.u32 4294901760, %v38_v35 }
  0x59   :  { %986 = vmatpush.msra.mxu2 %v2096_v28  ;;  %1011 = vmatpush.msra.mxu3 %v2054_v16  ;;  %v2258_v28 = vsub.f32 %v70_v18, %v2230_v20 }
  0x5a   :  { %819 = vmatmul.f32.vlgmr.msrb.gmra.mxu1 %v1848_v61  ;;  %905 = vmatpush.msra.mxu0 %v2069_v21  ;;  %v2311_v50 = vsub.f32 %v38_v35, %v2290_v42 }
  0x5b   :  { %1095 = vmatpush.msrb.mxu2 %v2065_v19  ;;  %949 = vmatpush.msra.mxu1 %v948_v49 }
  0x5c   :  { %1013 = vmatpush.msra.mxu3 %v2069_v21  ;;  %1035 = vmatpush.msrb.mxu0 %v928_v15 }
  0x5d   :  { %1097 = vmatpush.msrb.mxu2 %v2083_v26  ;;  %955 = vmatpush.msra.mxu1 %v954_v55 }
  0x5e   :  { %1129 = vmatpush.msrb.mxu3 %v1128_v53  ;;  %1039 = vmatpush.msrb.mxu0 %v934_v11 }
  0x5f   :  { %1069 = vmatpush.msrb.mxu1 %v2023_v8  ;;  %1099 = vmatpush.msrb.mxu2 %v2098_v29  ;;  %v1152_v8 = vand.u32 4294901760, %v1151_v63 }
  0x60   :  { %1135 = vmatpush.msrb.mxu3 %v1134_v58  ;;  %989 = vmatmul.f32.vlgmr.msra.gmra.mxu2 %v1840_v56  ;;  %v1546_v58 = vand.u32 4294901760, %v2311_v50 }
  0x61   :  { %1043 = vmatpush.msrb.mxu0 %v940_v25  ;;  %1071 = vmatpush.msrb.mxu1 %v2029_v3  ;;  %v2193_v3 = vand.u32 4294901760, %v61_v7 }
  0x62   :  { %1101 = vmatpush.msrb.mxu2 %v2114_v37  ;;  %1141 = vmatpush.msrb.mxu3 %v1140_v62  ;;  %v1547_v63 = vsub.f32 %v2311_v50, %v1546_v58 }
  0x63   :  { %911 = vmatmul.f32.vlgmr.msra.gmra.mxu0 %v1858_v6  ;;  %1017 = vmatmul.f32.vlgmr.msra.gmra.mxu3 %v1848_v61  ;;  %v2210_v14 = vsub.f32 %v61_v7, %v2193_v3 }
  0x64   :  { %1047 = vmatpush.msrb.mxu0 %v946_v33  ;;  %1073 = vmatpush.msrb.mxu1 %v2041_v13  ;;  %v45_v13 = vld [vmem:[#allocation2 + $0x70] sm:$0xff] }
  0x65   :  { %1103 = vmatpush.msrb.mxu2 %v2129_v44  ;;  %1147 = vmatpush.msrb.mxu3 %v1146_v1  ;;  %v2215_v15 = vand.u32 4294901760, %v45_v13  ;;  %v1330_v11 = vand.u32 4294901760, %v2210_v14  ;;  %v1548_v1 = vand.u32 4294901760, %v1547_v63 }
  0x66   :  { %957 = vmatmul.f32.vlgmr.msra.gmra.mxu1 %v1831_v51  ;;  %1051 = vmatpush.msrb.mxu0 %v952_v39  ;;  %v2279_v39 = vand.u32 4294901760, %v46_v32 }
  0x67   :  { %1233 = vmatpush.msra.mxu2 %v1126_v36  ;;  %1075 = vmatpush.msrb.mxu1 %v2054_v16  ;;  %v37_v16 = vld [vmem:[#allocation2 + $0x30] sm:$0xff]  ;;  %v2239_v23 = vsub.f32 %v45_v13, %v2215_v15  ;;  %v1331_v22 = vsub.f32 %v2210_v14, %v1330_v11 }
  0x68   :  { %1153 = vmatpush.msrb.mxu3 %v1152_v8  ;;  %1172 = vmatpush.msra.mxu0 %v2091_v27  ;;  %v2303_v47 = vsub.f32 %v46_v32, %v2279_v39 }
  0x69   :  { %1237 = vmatpush.msra.mxu2 %v1132_v43  ;;  %1077 = vmatpush.msrb.mxu1 %v2069_v21  ;;  %v62_v21 = vld [vmem:[#allocation2 + $0xf8] sm:$0xff]  ;;  %v1342_v31 = vand.u32 4294901760, %v2239_v23  ;;  %v1332_v36 = vand.u32 4294901760, %v1331_v22  ;;  %v1338_v43 = vand.u32 4294901760, %v1337_v34 }
  0x6a   :  { %1267 = vmatpush.msra.mxu3 %v2065_v19  ;;  %1109 = vmatmul.f32.vlgmr.msrb.gmra.mxu2 %v1858_v6  ;;  %v2247_v25 = vand.u32 4294901760, %v62_v21  ;;  %v1540_v55 = vand.u32 4294901760, %v2303_v47 }
  0x6b   :  { %1175 = vmatpush.msra.mxu0 %v2109_v30  ;;  %1203 = vmatpush.msra.mxu1 %v2065_v19  ;;  %v2228_v19 = vand.u32 4294901760, %v37_v16 }
  0x6c   :  { %1241 = vmatpush.msra.mxu2 %v1138_v48  ;;  %1269 = vmatpush.msra.mxu3 %v2083_v26  ;;  %v2273_v30 = vsub.f32 %v62_v21, %v2247_v25  ;;  %v1541_v60 = vsub.f32 %v2303_v47, %v1540_v55 }
  0x6d   :  { %1053 = vmatmul.f32.vlgmr.msrb.gmra.mxu0 %v1831_v51  ;;  %1155 = vmatmul.f32.vlgmr.msrb.gmra.mxu3 %v1831_v51  ;;  %v2255_v27 = vsub.f32 %v37_v16, %v2228_v19 }
  0x6e   :  { %1178 = vmatpush.msra.mxu0 %v2120_v40  ;;  %1205 = vmatpush.msra.mxu1 %v2083_v26  ;;  %v54_v26 = vld [vmem:[#allocation2 + $0xb8] sm:$0xff]  ;;  %v1343_v40 = vsub.f32 %v2239_v23, %v1342_v31  ;;  %v1542_v0 = vand.u32 4294901760, %v1541_v60 }
  0x6f   :  { %1245 = vmatpush.msra.mxu2 %v1144_v54  ;;  %1271 = vmatpush.msra.mxu3 %v2098_v29  ;;  %v2265_v33 = vand.u32 4294901760, %v54_v26  ;;  %v1348_v38 = vand.u32 4294901760, %v2255_v27 }
  0x70   :  { %1079 = vmatmul.f32.vlgmr.msrb.gmra.mxu1 %v1831_v51  ;;  %1181 = vmatpush.msra.mxu0 %v2136_v46  ;;  %v1344_v48 = vand.u32 4294901760, %v1343_v40 }
  0x71   :  { %1207 = vmatpush.msra.mxu1 %v2098_v29  ;;  %1249 = vmatpush.msra.mxu2 %v1150_v59  ;;  %v1326_v29 = vand.u32 4294901760, %v1325_v17  ;;  %v2288_v41 = vsub.f32 %v54_v26, %v2265_v33  ;;  %v1349_v46 = vsub.f32 %v2255_v27, %v1348_v38 }
  0x72   :  { %1273 = vmatpush.msra.mxu3 %v2114_v37  ;;  %1184 = vmatpush.msra.mxu0 %v2151_v52 }
  0x73   :  { %1370 = vmatpush.msrb.mxu2 %v2199_v4  ;;  %1209 = vmatpush.msra.mxu1 %v2114_v37  ;;  %v1522_v37 = vand.u32 4294901760, %v2258_v28  ;;  %v1534_v49 = vand.u32 4294901760, %v2288_v41  ;;  %v1350_v54 = vand.u32 4294901760, %v1349_v46 }
  0x74   :  { %1275 = vmatpush.msra.mxu3 %v2129_v44  ;;  %1293 = vmatpush.msrb.mxu0 %v2184_v2 }
  0x75   :  { %1373 = vmatpush.msrb.mxu2 %v2210_v14  ;;  %1211 = vmatpush.msra.mxu1 %v2129_v44  ;;  %v1528_v44 = vand.u32 4294901760, %v2273_v30  ;;  %v1523_v45 = vsub.f32 %v2258_v28, %v1522_v37  ;;  %v1535_v57 = vsub.f32 %v2288_v41, %v1534_v49 }
  0x76   :  { %1401 = vmatpush.msrb.mxu3 %v2184_v2  ;;  %1251 = vmatmul.f32.vlgmr.msra.gmra.mxu2 %v1831_v51 }
  0x77   :  { %1295 = vmatpush.msrb.mxu0 %v2193_v3  ;;  %1327 = vmatpush.msrb.mxu1 %v1326_v29  ;;  %v1529_v52 = vsub.f32 %v2273_v30, %v1528_v44  ;;  %v1524_v53 = vand.u32 4294901760, %v1523_v45  ;;  %v1536_v62 = vand.u32 4294901760, %v1535_v57 }
  0x78   :  { %1376 = vmatpush.msrb.mxu2 %v2223_v10  ;;  %1403 = vmatpush.msrb.mxu3 %v2193_v3 }
  0x79   :  { %1187 = vmatmul.f32.vlgmr.msra.gmra.mxu0 %v1840_v56  ;;  %1277 = vmatmul.f32.vlgmr.msra.gmra.mxu3 %v1831_v51  ;;  %v1530_v59 = vand.u32 4294901760, %v1529_v52 }
  0x7a   :  { %1297 = vmatpush.msrb.mxu0 %v2205_v5  ;;  %1333 = vmatpush.msrb.mxu1 %v1332_v36 }
  0x7b   :  { %1379 = vmatpush.msrb.mxu2 %v2239_v23  ;;  %1405 = vmatpush.msrb.mxu3 %v2205_v5 }
  0x7c   :  { %1215 = vmatmul.f32.vlgmr.msra.gmra.mxu1 %v1848_v61  ;;  %1299 = vmatpush.msrb.mxu0 %v2215_v15 }
  0x7d   :  { %1339 = vmatpush.msrb.mxu1 %v1338_v43  ;;  %1382 = vmatpush.msrb.mxu2 %v2255_v27 }
  0x7e   :  { %1407 = vmatpush.msrb.mxu3 %v2215_v15  ;;  %1301 = vmatpush.msrb.mxu0 %v2228_v19 }
  0x7f   :  { %1491 = vmatpush.msra.mxu2 %v2230_v20  ;;  %1345 = vmatpush.msrb.mxu1 %v1344_v48 }
  0x80   :  { %1409 = vmatpush.msrb.mxu3 %v2228_v19  ;;  %1385 = vmatmul.f32.vlgmr.msrb.gmra.mxu2 %v1840_v56 }
  0x81   :  { %1431 = vmatpush.msra.mxu0 %v1324_v9  ;;  %1493 = vmatpush.msra.mxu2 %v2247_v25 }
  0x82   :  { %1525 = vmatpush.msra.mxu3 %v1524_v53  ;;  %1351 = vmatpush.msrb.mxu1 %v1350_v54 }
  0x83   :  { %1307 = vmatmul.f32.vlgmr.msrb.gmra.mxu0 %v1858_v6  ;;  %1413 = vmatmul.f32.vlgmr.msrb.gmra.mxu3 %v1848_v61 }
  0x84   :  { %1435 = vmatpush.msra.mxu0 %v1330_v11  ;;  %1465 = vmatpush.msra.mxu1 %v2184_v2 }
  0x85   :  { %1495 = vmatpush.msra.mxu2 %v2265_v33  ;;  %1531 = vmatpush.msra.mxu3 %v1530_v59 }
  0x86   :  { %1353 = vmatmul.f32.vlgmr.msrb.gmra.mxu1 %v1831_v51  ;;  %1439 = vmatpush.msra.mxu0 %v1336_v24 }
  0x87   :  { %1467 = vmatpush.msra.mxu1 %v2193_v3  ;;  %1497 = vmatpush.msra.mxu2 %v2279_v39 }
  0x88   :  { %1537 = vmatpush.msra.mxu3 %v1536_v62  ;;  %1443 = vmatpush.msra.mxu0 %v1342_v31 }
  0x89   :  { %1469 = vmatpush.msra.mxu1 %v2205_v5  ;;  %1499 = vmatpush.msra.mxu2 %v2290_v42 }
  0x8a   :  { %1543 = vmatpush.msra.mxu3 %v1542_v0  ;;  %1447 = vmatpush.msra.mxu0 %v1348_v38 }
  0x8b   :  { %1629 = vmatpush.msrb.mxu2 %v1522_v37  ;;  %1471 = vmatpush.msra.mxu1 %v2215_v15 }
  0x8c   :  { %1505 = vmatmul.f32.vlgmr.msra.gmra.mxu2 %v1858_v6  ;;  %1549 = vmatpush.msra.mxu3 %v1548_v1  ;;  %v2366_v6 = vld [vmem:[%s2411_s2] sm:$0xff] }
  0x8d   :  { %1568 = vmatpush.msrb.mxu0 %v2258_v28  ;;  %1633 = vmatpush.msrb.mxu2 %v1528_v44  ;;  %v73_v2 = vperm.slane %v2366_v6, 0  ;;  %v75_v22 = vperm.slane %v2366_v6, 2  ;;  %v76_v36 = vperm.slane %v2366_v6, 3  ;;  %v77_v53 = vperm.slane %v2366_v6, 4 }
  0x8e   :  { %1663 = vmatpush.msrb.mxu3 %v2230_v20  ;;  %1449 = vmatmul.f32.vlgmr.msra.gmra.mxu0 %v1831_v51 }
  0x8f   :  { %1473 = vmatpush.msra.mxu1 %v2228_v19  ;;  %1551 = vmatmul.f32.vlgmr.msra.gmra.mxu3 %v1831_v51 }
  0x90   :  { %1571 = vmatpush.msrb.mxu0 %v2273_v30  ;;  %1637 = vmatpush.msrb.mxu2 %v1534_v49 }
  0x91   :  { %1599 = vmatpush.msrb.mxu1 %v2230_v20  ;;  %1665 = vmatpush.msrb.mxu3 %v2247_v25 }
  0x92   :  { %1475 = vmatmul.f32.vlgmr.msra.gmra.mxu1 %v1831_v51  ;;  %1574 = vmatpush.msrb.mxu0 %v2288_v41 }
  0x93   :  { %1601 = vmatpush.msrb.mxu1 %v2247_v25  ;;  %1641 = vmatpush.msrb.mxu2 %v1540_v55 }
  0x94   :  { %1667 = vmatpush.msrb.mxu3 %v2265_v33  ;;  %1577 = vmatpush.msrb.mxu0 %v2303_v47 }
  0x95   :  { %1603 = vmatpush.msrb.mxu1 %v2265_v33  ;;  %1645 = vmatpush.msrb.mxu2 %v1546_v58 }
  0x96   :  { %1669 = vmatpush.msrb.mxu3 %v2279_v39  ;;  %1647 = vmatmul.f32.vlgmr.msrb.gmra.mxu2 %v1831_v51 }
  0x97   :  { %1580 = vmatpush.msrb.mxu0 %v2311_v50  ;;  %1605 = vmatpush.msrb.mxu1 %v2279_v39 }
  0x98   :  { %1671 = vmatpush.msrb.mxu3 %v2290_v42  ;;  %1583 = vmatmul.f32.vlgmr.msrb.gmra.mxu0 %v1840_v56  ;;  %v74_v56 = vperm.slane %v2366_v6, 1 }
  0x99   :  { %1673 = vmatmul.f32.vlgmr.msrb.gmra.mxu3 %v1831_v51  ;;  %1607 = vmatpush.msrb.mxu1 %v2290_v42 }
  0x9a   :  { %1611 = vmatmul.f32.vlgmr.msrb.gmra.mxu1 %v1848_v61  ;;  %v120_v7 = vpop.f32.mrf.mxu0 }
  0x9b   :  { %v121_v8 = vadd.f32 %v120_v7, %v73_v2  ;;  %v78_v2 = vperm.slane %v2366_v6, 5 }
  0x9e   :  { %v166_v3 = vpop.f32.mrf.mxu1  ;;  %v198_v12 = vpop.f32.mrf.mxu2 }
  0x9f   :  { %v167_v4 = vadd.f32 %v166_v3, %v121_v8 }
  0xa1   :  { %v199_v13 = vadd.f32 %v198_v12, %v167_v4 }
  0xa2   :  { %v226_v5 = vpop.f32.mrf.mxu3 }
  0xa3   :  { %v227_v14 = vadd.f32 %v226_v5, %v199_v13 }
  0xa6   :  { %v262_v9 = vpop.f32.mrf.mxu0 }
  0xa7   :  { %v263_v15 = vadd.f32 %v262_v9, %v227_v14 }
  0xaa   :  { %v288_v16 = vpop.f32.mrf.mxu1 }
  0xab   :  { %v289_v18 = vadd.f32 %v288_v16, %v263_v15  ;;  %v318_v10 = vpop.f32.mrf.mxu2 }
  0xac   :  { %v319_v51 = vadd.f32 %v318_v10, %v74_v56  ;;  %v79_v10 = vperm.slane %v2366_v6, 6 }
  0xad   :  { %1677 = vst [vmem:[%s2412_s3] sm:$0xff] %v289_v18 }
  0xaf   :  { %v364_v61 = vpop.f32.mrf.mxu3 }
  0xb0   :  { %v365_v11 = vadd.f32 %v364_v61, %v319_v51 }
  0xb2   :  { %v396_v19 = vpop.f32.mrf.mxu0 }
  0xb3   :  { %v397_v20 = vadd.f32 %v396_v19, %v365_v11 }
  0xb5   :  { %v460_v17 = vpop.f32.mrf.mxu2 }
  0xb6   :  { %v424_v21 = vpop.f32.mrf.mxu1 }
  0xb7   :  { %v425_v23 = vadd.f32 %v424_v21, %v397_v20 }
  0xb9   :  { %v461_v24 = vadd.f32 %v460_v17, %v425_v23  ;;  %v486_v25 = vpop.f32.mrf.mxu3 }
  0xbb   :  { %v487_v26 = vadd.f32 %v486_v25, %v461_v24 }
  0xbd   :  { %1678 = vst [vmem:[%s2412_s3 + $0x8] sm:$0xff] %v487_v26 }
  0xbe   :  { %v516_v27 = vpop.f32.mrf.mxu0 }
  0xbf   :  { %v517_v28 = vadd.f32 %v516_v27, %v75_v22  ;;  %v80_v22 = vperm.slane %v2366_v6, 7 }
  0xc1   :  { %v594_v31 = vpop.f32.mrf.mxu2 }
  0xc2   :  { %v562_v29 = vpop.f32.mrf.mxu1 }
  0xc3   :  { %v563_v32 = vadd.f32 %v562_v29, %v517_v28 }
  0xc5   :  { %v595_v33 = vadd.f32 %v594_v31, %v563_v32  ;;  %v622_v34 = vpop.f32.mrf.mxu3 }
  0xc7   :  { %v623_v30 = vadd.f32 %v622_v34, %v595_v33 }
  0xca   :  { %v658_v35 = vpop.f32.mrf.mxu0 }
  0xcb   :  { %v659_v37 = vadd.f32 %v658_v35, %v623_v30 }
  0xcd   :  { %v684_v38 = vpop.f32.mrf.mxu1  ;;  %v714_v39 = vpop.f32.mrf.mxu2 }
  0xce   :  { %v685_v40 = vadd.f32 %v684_v38, %v659_v37  ;;  %v715_v41 = vadd.f32 %v714_v39, %v76_v36 }
  0xd0   :  { %1679 = vst [vmem:[%s2412_s3 + $0x10] sm:$0xff] %v685_v40  ;;  %v760_v42 = vpop.f32.mrf.mxu3 }
  0xd1   :  { %v761_v43 = vadd.f32 %v760_v42, %v715_v41 }
  0xd4   :  { %v792_v44 = vpop.f32.mrf.mxu0 }
  0xd5   :  { %v793_v45 = vadd.f32 %v792_v44, %v761_v43 }
  0xd7   :  { %v820_v46 = vpop.f32.mrf.mxu1  ;;  %v856_v47 = vpop.f32.mrf.mxu2 }
  0xd8   :  { %v821_v48 = vadd.f32 %v820_v46, %v793_v45 }
  0xda   :  { %v857_v49 = vadd.f32 %v856_v47, %v821_v48  ;;  %v882_v50 = vpop.f32.mrf.mxu3 }
  0xdc   :  { %v883_v52 = vadd.f32 %v882_v50, %v857_v49 }
  0xde   :  { %1680 = vst [vmem:[%s2412_s3 + $0x18] sm:$0xff] %v883_v52 }
  0xe0   :  { %v912_v54 = vpop.f32.mrf.mxu0 }
  0xe1   :  { %v913_v55 = vadd.f32 %v912_v54, %v77_v53 }
  0xe3   :  { %v958_v57 = vpop.f32.mrf.mxu1  ;;  %v990_v58 = vpop.f32.mrf.mxu2 }
  0xe4   :  { %v959_v59 = vadd.f32 %v958_v57, %v913_v55 }
  0xe6   :  { %v991_v60 = vadd.f32 %v990_v58, %v959_v59  ;;  %v1018_v62 = vpop.f32.mrf.mxu3 }
  0xe8   :  { %v1019_v63 = vadd.f32 %v1018_v62, %v991_v60 }
  0xea   :  { %v1054_v0 = vpop.f32.mrf.mxu0 }
  0xeb   :  { %v1055_v1 = vadd.f32 %v1054_v0, %v1019_v63 }
  0xed   :  { %v1080_v7 = vpop.f32.mrf.mxu1  ;;  %v1110_v8 = vpop.f32.mrf.mxu2 }
  0xee   :  { %v1081_v3 = vadd.f32 %v1080_v7, %v1055_v1  ;;  %v1111_v12 = vadd.f32 %v1110_v8, %v78_v2 }
  0xf0   :  { %1681 = vst [vmem:[%s2412_s3 + $0x20] sm:$0xff] %v1081_v3  ;;  %v1156_v4 = vpop.f32.mrf.mxu3 }
  0xf1   :  { %v1157_v13 = vadd.f32 %v1156_v4, %v1111_v12 }
  0xf6   :  { %v1188_v5 = vpop.f32.mrf.mxu0 }
  0xf7   :  { %v1189_v14 = vadd.f32 %v1188_v5, %v1157_v13 }
  0xf9   :  { %v1216_v9 = vpop.f32.mrf.mxu1  ;;  %v1252_v15 = vpop.f32.mrf.mxu2 }
  0xfa   :  { %v1217_v56 = vadd.f32 %v1216_v9, %v1189_v14 }
  0xfc   :  { %v1253_v16 = vadd.f32 %v1252_v15, %v1217_v56  ;;  %v1278_v18 = vpop.f32.mrf.mxu3 }
  0xfe   :  { %v1279_v51 = vadd.f32 %v1278_v18, %v1253_v16 }
 0x100   :  { %1682 = vst [vmem:[%s2412_s3 + $0x28] sm:$0xff] %v1279_v51  ;;  %v1308_v61 = vpop.f32.mrf.mxu0 }
 0x101   :  { %v1309_v11 = vadd.f32 %v1308_v61, %v79_v10 }
 0x103   :  { %v1354_v19 = vpop.f32.mrf.mxu1  ;;  %v1386_v20 = vpop.f32.mrf.mxu2 }
 0x104   :  { %v1355_v21 = vadd.f32 %v1354_v19, %v1309_v11 }
 0x106   :  { %v1387_v17 = vadd.f32 %v1386_v20, %v1355_v21  ;;  %v1414_v23 = vpop.f32.mrf.mxu3 }
 0x108   :  { %v1415_v24 = vadd.f32 %v1414_v23, %v1387_v17 }
 0x10b   :  { %v1450_v25 = vpop.f32.mrf.mxu0 }
 0x10c   :  { %v1451_v26 = vadd.f32 %v1450_v25, %v1415_v24 }
 0x10f   :  { %v1476_v27 = vpop.f32.mrf.mxu1  ;;  %v1506_v28 = vpop.f32.mrf.mxu2 }
 0x110   :  { %v1477_v29 = vadd.f32 %v1476_v27, %v1451_v26  ;;  %v1507_v31 = vadd.f32 %v1506_v28, %v80_v22 }
 0x112   :  { %1683 = vst [vmem:[%s2412_s3 + $0x30] sm:$0xff] %v1477_v29  ;;  %v1552_v32 = vpop.f32.mrf.mxu3 }
 0x113   :  { %v1553_v33 = vadd.f32 %v1552_v32, %v1507_v31 }
 0x115   :  { %v1584_v34 = vpop.f32.mrf.mxu0 }
 0x116   :  { %v1585_v30 = vadd.f32 %v1584_v34, %v1553_v33 }
 0x117   :  { %v1612_v35 = vpop.f32.mrf.mxu1 }
 0x118   :  { %v1613_v36 = vadd.f32 %v1612_v35, %v1585_v30 }
 0x119   :  { %v1648_v37 = vpop.f32.mrf.mxu2 }
 0x11a   :  { %v1649_v38 = vadd.f32 %v1648_v37, %v1613_v36 }
 0x11c   :  { %v1674_v39 = vpop.f32.mrf.mxu3 }
 0x11d   :  { %v1675_v40 = vadd.f32 %v1674_v39, %v1649_v38 }
 0x11f   :  { %1684 = vst [vmem:[%s2412_s3 + $0x38] sm:$0xff] %v1675_v40 }
 0x120   :  { %1689 = vsyncpa [#allocation3], 1 }

</bundles_post_ra>
